<compile_context>
chip_gen: v6e
topology: v6e:2x2x1
jax: 0.10.0
libtpu: 0.0.40
codegen_flags: <defaults>
</compile_context>

<pallas_src>
import functools

import jax
import jax.numpy as jnp
from jax import lax
from jax.experimental import pallas as pl
from jax.experimental.pallas import tpu as pltpu

LEAKY_SLOPE = 0.01            # nn.LeakyReLU default negative_slope
DIMS = (29, 15, 7, 3, 1)      # Linear sizes: 29 -> 15 -> 7 -> 3 -> 1
PACK_ROWS = 16                # rows reserved per layer in the packed param array
PACK_COLS = DIMS[0] + 1       # 29 weight columns + 1 bias column


def _round_up(n, m):
    return ((n + m - 1) // m) * m


def _leaky_relu(h):
    # max(h, a*h) == LeakyReLU(h) for 0 < a < 1 (vmul + vmax on the VPU).
    return jnp.maximum(h, LEAKY_SLOPE * h)


def _pack_params(params):
    """Pack the 4 (W, b) pairs into one (64, 30) f32 array.

    Layer l occupies rows [16*l, 16*l + out_l); cols [0, in_l) hold W_l
    (PyTorch-native (out, in) layout) and col in_l holds b_l.
    """
    wp = jnp.zeros((4 * PACK_ROWS, PACK_COLS), jnp.float32)
    for l, (w, b) in enumerate(params):
        out_d, in_d = w.shape
        r0 = l * PACK_ROWS
        wp = wp.at[r0:r0 + out_d, :in_d].set(w.astype(jnp.float32))
        wp = wp.at[r0:r0 + out_d, in_d].set(b.reshape(-1).astype(jnp.float32))
    return wp


def mlp_kernel(x_ref, wp_ref, o_ref):
    """One batch tile of the 4-layer MLP, fully fused, batch-on-lanes.

    x_ref  : (TB, 29)  VMEM  batch tile of the input (f32 or bf16)
    wp_ref : (64, 30)  VMEM  packed weights+biases, resident across grid steps
    o_ref  : (1, TB)   VMEM  lane-dense output row
    """
    x = x_ref[...]                                           # (TB, 29)

    # ---- Layer 1: W1 (15,29) x x (TB,29) contracted on dim 1 -> (15, TB).
    # trans-B dot: no materialized x.T, batch lands on the lane axis.
    w1 = wp_ref[0:DIMS[1], 0:DIMS[0]].astype(x.dtype)        # (15, 29)
    b1 = wp_ref[0:DIMS[1], DIMS[0]:DIMS[0] + 1]              # (15, 1)
    h = lax.dot_general(w1, x,
                        dimension_numbers=(((1,), (1,)), ((), ())),
                        preferred_element_type=jnp.float32)  # (15, TB)
    h = _leaky_relu(h + b1)
    # Dropout(0.2) -> identity (eval mode).

    # ---- Layers 2..4: (out, in) @ (in, TB) -> (out, TB).
    for l, (in_d, out_d) in enumerate(zip(DIMS[1:-1], DIMS[2:]), start=1):
        r0 = l * PACK_ROWS
        w = wp_ref[r0:r0 + out_d, 0:in_d]                    # (out, in)
        b = wp_ref[r0:r0 + out_d, in_d:in_d + 1]             # (out, 1)
        h = jnp.dot(w, h, preferred_element_type=jnp.float32) + b
        if l < 3:                                            # no act after layer 4
            h = _leaky_relu(h)

    o_ref[...] = h.astype(o_ref.dtype)                       # lane-dense (1, TB)


@functools.partial(jax.jit, static_argnames=("block_b",))
def mlp_inhibition_forward(x, params, block_b=8192):
    """Forward pass of MLP_Inhibition. x: (B, 29) -> (B,) float32.

    x may be float32 or bfloat16 (bf16 halves HBM read traffic; most valuable
    on v5e).  No wrapper-side pad/cast of x is performed: the grid uses a
    non-divisible last block whose out-of-bounds output lanes are masked on
    writeback.  Double-buffered VMEM footprint at block_b=8192 is ~8.5 MiB
    (the (tb,29) tile is lane-padded to 128 in VMEM), well under the 32 MiB
    scoped limit on every generation (v7x physical VMEM is 64 MiB).
    """
    B, Din = x.shape
    assert Din == DIMS[0]

    wp = _pack_params(params)

    # Batch tile: multiple of 128, no bigger than needed / requested.
    tb = max(128, min(_round_up(block_b, 128), _round_up(B, 128)))
    steps = pl.cdiv(B, tb)
    # Prefer an even grid (>=2 steps) so v7x's two TensorCores both get work;
    # on single-TC v5e/v6e the extra step costs ~0.35us (negligible).
    if steps % 2 == 1 and B > 128:
        tb_even = _round_up(pl.cdiv(B, steps + 1), 128)
        if pl.cdiv(B, tb_even) % 2 == 0:
            tb = tb_even
            steps = pl.cdiv(B, tb)

    out = pl.pallas_call(
        mlp_kernel,
        out_shape=jax.ShapeDtypeStruct((1, B), jnp.float32),
        grid_spec=pltpu.PrefetchScalarGridSpec(
            num_scalar_prefetch=0,
            grid=(steps,),
            in_specs=[
                pl.BlockSpec((tb, DIMS[0]), lambda i: (i, 0)),
                # Constant block index: packed params stay VMEM-resident
                # across grid steps (single startup DMA, no per-step re-DMA).
                pl.BlockSpec(wp.shape, lambda i: (0, 0)),
            ],
            out_specs=pl.BlockSpec((1, tb), lambda i: (0, i)),
        ),
        compiler_params=pltpu.CompilerParams(
            dimension_semantics=("parallel",),
            vmem_limit_bytes=32 * 1024 * 1024,
        ),
    )(x, wp)

    # (1, B) -> (B,); equivalent to PyTorch's x.squeeze(1).
    return out[0]


def init_params(key):
    """PyTorch-style uniform(-1/sqrt(fan_in), 1/sqrt(fan_in)) init.

    Weights stored (out, in) (PyTorch-native); biases stored (out,).
    """
    params = []
    for fan_in, fan_out in zip(DIMS[:-1], DIMS[1:]):
        key, kw, kb = jax.random.split(key, 3)
        bound = 1.0 / jnp.sqrt(jnp.float32(fan_in))
        w = jax.random.uniform(kw, (fan_out, fan_in), jnp.float32,
                               minval=-bound, maxval=bound)
        b = jax.random.uniform(kb, (fan_out,), jnp.float32,
                               minval=-bound, maxval=bound)
        params.append((w, b))
    return params


def reference_forward(x, params):
    """Plain-JAX reference of the same forward pass (eval mode)."""
    h = x.astype(jnp.float32)
    for idx, (w, b) in enumerate(params):
        h = h @ w.T + b
        if idx < len(params) - 1:
            h = _leaky_relu(h)
    return h[:, 0]


if __name__ == "__main__":
    key = jax.random.PRNGKey(0)
    k_params, k_x = jax.random.split(key)
    params = init_params(k_params)

    # Small batch consistent with the module: x is (B, 29).
    B = 2
    x = jax.random.normal(k_x, (B, DIMS[0]), jnp.float32)
    y = jax.block_until_ready(mlp_inhibition_forward(x, params))
    y_ref = reference_forward(x, params)
    assert y.shape == (B,)
    assert jnp.allclose(y, y_ref, atol=1e-4, rtol=1e-4), "small-batch mismatch"

    # Multi-step grid with a partial (masked-writeback) last block and no
    # wrapper-side padding: B=300 -> tb=256, grid=(2,).
    B2 = 300
    x2 = jax.random.normal(k_x, (B2, DIMS[0]), jnp.float32)
    y2 = jax.block_until_ready(mlp_inhibition_forward(x2, params))
    y2_ref = reference_forward(x2, params)
    assert y2.shape == (B2,)
    assert jnp.allclose(y2, y2_ref, atol=1e-4, rtol=1e-4), "multi-tile mismatch"

    print("KERNEL_OK")
</pallas_src>

<mosaic_0001>
module attributes {stable_mosaic.version = 11 : i64} {
  func.func @mlp_kernel(%arg0: i32, %arg1: memref<128x29xf32, #tpu.memory_space<vmem>>, %arg2: memref<64x30xf32, #tpu.memory_space<vmem>>, %arg3: memref<1x128xf32, #tpu.memory_space<vmem>>) attributes {dimension_semantics = [#tpu.dimension_semantics<parallel>], iteration_bounds = array<i64: 1>, scalar_prefetch = 0 : i64, scratch_operands = 0 : i64, tpu.core_type = #tpu.core_type<tc>, window_params = [{transform_indices = @transform_0, window_bounds = array<i64: 128, 29>}, {pipeline_mode = #tpu.pipeline_mode<synchronous>, transform_indices = @transform_1, window_bounds = array<i64: 64, 30>}, {transform_indices = @transform_2, window_bounds = array<i64: 1, 128>}]} {
    %c0 = arith.constant 0 : index
    %c0_0 = arith.constant 0 : index
    %0 = vector.load %arg1[%c0, %c0_0] : memref<128x29xf32, #tpu.memory_space<vmem>>, vector<128x29xf32>
    %c0_1 = arith.constant 0 : index
    %c0_2 = arith.constant 0 : index
    %1 = vector.load %arg2[%c0_1, %c0_2] : memref<64x30xf32, #tpu.memory_space<vmem>>, vector<15x29xf32>
    %c0_3 = arith.constant 0 : index
    %c29 = arith.constant 29 : index
    %2 = vector.load %arg2[%c0_3, %c29] : memref<64x30xf32, #tpu.memory_space<vmem>>, vector<15x1xf32>
    %cst = arith.constant dense<0.000000e+00> : vector<15x128xf32>
    %3 = tpu.matmul %1, %0, %cst {dimension_numbers = #tpu.dot_dimension_numbers<[1], [1], [0], [0], [0, 0, 1, 0], [], []>} : vector<15x29xf32>, vector<128x29xf32>, vector<15x128xf32> -> vector<15x128xf32>
    %4 = vector.broadcast %2 : vector<15x1xf32> to vector<15x128xf32>
    %5 = arith.addf %3, %4 : vector<15x128xf32>
    %cst_4 = arith.constant 0.00999999977 : f32
    %6 = vector.broadcast %cst_4 : f32 to vector<15x128xf32>
    %7 = arith.mulf %6, %5 : vector<15x128xf32>
    %8 = arith.maximumf %5, %7 : vector<15x128xf32>
    %c16 = arith.constant 16 : index
    %c0_5 = arith.constant 0 : index
    %9 = vector.load %arg2[%c16, %c0_5] : memref<64x30xf32, #tpu.memory_space<vmem>>, vector<7x15xf32>
    %c16_6 = arith.constant 16 : index
    %c15 = arith.constant 15 : index
    %10 = vector.load %arg2[%c16_6, %c15] : memref<64x30xf32, #tpu.memory_space<vmem>>, vector<7x1xf32>
    %cst_7 = arith.constant dense<0.000000e+00> : vector<7x128xf32>
    %11 = tpu.matmul %9, %8, %cst_7 {dimension_numbers = #tpu.dot_dimension_numbers<[1], [0], [0], [1], [0, 0, 1, 1], [], []>} : vector<7x15xf32>, vector<15x128xf32>, vector<7x128xf32> -> vector<7x128xf32>
    %12 = vector.broadcast %10 : vector<7x1xf32> to vector<7x128xf32>
    %13 = arith.addf %11, %12 : vector<7x128xf32>
    %cst_8 = arith.constant 0.00999999977 : f32
    %14 = vector.broadcast %cst_8 : f32 to vector<7x128xf32>
    %15 = arith.mulf %14, %13 : vector<7x128xf32>
    %16 = arith.maximumf %13, %15 : vector<7x128xf32>
    %c32 = arith.constant 32 : index
    %c0_9 = arith.constant 0 : index
    %17 = vector.load %arg2[%c32, %c0_9] : memref<64x30xf32, #tpu.memory_space<vmem>>, vector<3x7xf32>
    %c32_10 = arith.constant 32 : index
    %c7 = arith.constant 7 : index
    %18 = vector.load %arg2[%c32_10, %c7] : memref<64x30xf32, #tpu.memory_space<vmem>>, vector<3x1xf32>
    %cst_11 = arith.constant dense<0.000000e+00> : vector<3x128xf32>
    %19 = tpu.matmul %17, %16, %cst_11 {dimension_numbers = #tpu.dot_dimension_numbers<[1], [0], [0], [1], [0, 0, 1, 1], [], []>} : vector<3x7xf32>, vector<7x128xf32>, vector<3x128xf32> -> vector<3x128xf32>
    %20 = vector.broadcast %18 : vector<3x1xf32> to vector<3x128xf32>
    %21 = arith.addf %19, %20 : vector<3x128xf32>
    %cst_12 = arith.constant 0.00999999977 : f32
    %22 = vector.broadcast %cst_12 : f32 to vector<3x128xf32>
    %23 = arith.mulf %22, %21 : vector<3x128xf32>
    %24 = arith.maximumf %21, %23 : vector<3x128xf32>
    %c48 = arith.constant 48 : index
    %c0_13 = arith.constant 0 : index
    %25 = vector.load %arg2[%c48, %c0_13] : memref<64x30xf32, #tpu.memory_space<vmem>>, vector<1x3xf32>
    %c48_14 = arith.constant 48 : index
    %c3 = arith.constant 3 : index
    %26 = vector.load %arg2[%c48_14, %c3] : memref<64x30xf32, #tpu.memory_space<vmem>>, vector<1x1xf32>
    %cst_15 = arith.constant dense<0.000000e+00> : vector<1x128xf32>
    %27 = tpu.matmul %25, %24, %cst_15 {dimension_numbers = #tpu.dot_dimension_numbers<[1], [0], [0], [1], [0, 0, 1, 1], [], []>} : vector<1x3xf32>, vector<3x128xf32>, vector<1x128xf32> -> vector<1x128xf32>
    %28 = vector.broadcast %26 : vector<1x1xf32> to vector<1x128xf32>
    %29 = arith.addf %27, %28 : vector<1x128xf32>
    %c0_16 = arith.constant 0 : index
    %c0_17 = arith.constant 0 : index
    %30 = vector.load %arg3[%c0_16, %c0_17] : memref<1x128xf32, #tpu.memory_space<vmem>>, vector<1x128xf32>
    tpu.vector_store %arg3[%c0_16, %c0_17], %29 {strides = array<i32>} : memref<1x128xf32, #tpu.memory_space<vmem>>, vector<1x128xf32>,
    return
  }
  func.func @transform_0(%arg0: i32) -> (i32, i32) {
    %c0_i32 = arith.constant 0 : i32
    %c0_i32_0 = arith.constant 0 : i32
    return %arg0, %c0_i32 : i32, i32
  }
  func.func @transform_1(%arg0: i32) -> (i32, i32) {
    %c0_i32 = arith.constant 0 : i32
    %c0_i32_0 = arith.constant 0 : i32
    %c0_i32_1 = arith.constant 0 : i32
    return %c0_i32, %c0_i32_0 : i32, i32
  }
  func.func @transform_2(%arg0: i32) -> (i32, i32) {
    %c0_i32 = arith.constant 0 : i32
    %c0_i32_0 = arith.constant 0 : i32
    return %c0_i32, %arg0 : i32, i32
  }
}

</mosaic_0001>

<bundles_post_ra>
// kernel: mlp_inhibition_forward.1
= control target key start
LH: loop header
LB: loop body
LE: loop exit
PB: predicated region body
PF: predicated region fallthrough
CT: control target
= control target key end

     0   :  { %vm40_vm0 = vcmask 236544   ;;  %v573_v2 = vmov 29   ;;  %s700_s0 = inlined_call_operand.vmem [shape: f32[2,29], index: 0, kind: input, shape index: {}]   ;;  %s701_s1 = inlined_call_operand.vmem [shape: f32[64,30], index: 1, kind: input, shape index: {}]   ;;  %s702_s2 = inlined_call_operand.hbm [shape: f32[1,2], index: 2, kind: output, shape index: {}]  }
   0x1   :  { %v27_v0 = vld [vmem:[%s700_s0 + $0x78] sm:$0xff]  ;;  %v26_v1 = vld [vmem:[%s700_s0 + $0x70] sm:$0xff]  ;;  %547 = vset.pattern.permute.xlu0 %v573_v2  ;;  %v25_v3 = vld [vmem:[%s700_s0 + $0x68] sm:$0xff] }
   0x2   :  { %488 = vmatprep.subr.msk.mxu0 %vm40_vm0, %v27_v0  ;;  %v28_v4 = vld [vmem:[%s701_s1] sm:$0xff]  ;;  %v29_v5 = vld [vmem:[%s701_s1 + $0x8] sm:$0x7f] }
   0x3   :  { %489 = vmatpush3.xpose.msk.msra.mxu0 %vm40_vm0, %v27_v0  ;;  %520 = vmatprep.mubr.msk.f32.mxu0 %vm40_vm0, %v28_v4 }
   0x4   :  { %490 = vmatprep.subr.msk.mxu0 %vm40_vm0, %v26_v1 }
   0x7   :  { %491 = vmatpush3.xpose.msk.msra.mxu0 %vm40_vm0, %v26_v1 }
   0x8   :  { %7 = vsyncpa [#allocation3], 0  ;;  %492 = vmatprep.subr.msk.mxu0 %vm40_vm0, %v25_v3  ;;  %37 = vperm.xlu0 %547, %v29_v5   ;;  %v24_v6 = vld [vmem:[%s700_s0 + $0x60] sm:$0xff]  ;;  %v23_v7 = vld [vmem:[%s700_s0 + $0x58] sm:$0xff]  ;;  %v574_v19 = vmov 0.0   ;;  %vm575_vm1 = vmmov 0  }
   0x9   :  { %v22_v8 = vld [vmem:[%s700_s0 + $0x50] sm:$0xff]  ;;  %v21_v9 = vld [vmem:[%s700_s0 + $0x48] sm:$0xff]  ;;  %v20_v10 = vld [vmem:[%s700_s0 + $0x40] sm:$0xff]  ;;  %523 = vmatprep.subr.mxu1 %v574_v19  ;;  %527 = vmatprep.mubr.msk.f32.mxu1 %vm575_vm1, %v574_v19  ;;  %v576_v21 = vmov 15   ;;  %vm181_vm2 = vcmask 1046528   ;;  %vm178_vm3 = vcmask 121856  }
   0xa   :  { %v19_v11 = vld [vmem:[%s700_s0 + $0x38] sm:$0xff]  ;;  %v18_v12 = vld [vmem:[%s700_s0 + $0x30] sm:$0xff]  ;;  %v17_v13 = vld [vmem:[%s700_s0 + $0x28] sm:$0xff]  ;;  %548 = vset.pattern.permute.xlu1 %v576_v21  ;;  %v577_v33 = vmov 7   ;;  %vm263_vm4 = vcmask 56320   ;;  %v578_v41 = vmov 3  }
   0xb   :  { %493 = vmatpush3.xpose.msk.msra.mxu0 %vm40_vm0, %v25_v3  ;;  %v16_v14 = vld [vmem:[%s700_s0 + $0x20] sm:$0xff]  ;;  %v15_v15 = vld [vmem:[%s700_s0 + $0x18] sm:$0xff]  ;;  %v14_v16 = vld [vmem:[%s700_s0 + $0x10] sm:$0xff]  ;;  %vm350_vm5 = vcmask 1042432   ;;  %vm347_vm6 = vcmask 23552   ;;  %s579_s22 = smov [#allocation2]  }
   0xc   :  { %494 = vmatprep.subr.msk.mxu0 %vm40_vm0, %v24_v6  ;;  %32 = vperm.xlu0 %547, %v28_v4   ;;  %v13_v17 = vld [vmem:[%s700_s0 + $0x8] sm:$0xff]  ;;  %v12_v18 = vld [vmem:[%s700_s0] sm:$0xff]  ;;  %v172_v20 = vld [vmem:[%s701_s1 + $0x10] sm:$0x7f]  ;;  %s431_s23 = sshll.u32 %s579_s22, 4  ;;  %s432_s23 = int_to_ptr.vmem [resolvable:$true] %s431_s23 }
   0xd   :  { %175 = vperm.xlu1 %548, %v172_v20   ;;  %v257_v32 = vld [vmem:[%s701_s1 + $0x20] sm:$0x7]  ;;  %v341_v40 = vld [vmem:[%s701_s1 + $0x30] sm:$0x1]  ;;  %s551_s1 = scalar_lea.vmem %s432_s23, 16  ;;  %s555_s24 = scalar_lea.vmem %s432_s23, 32 }
   0xe   :  { %p552_p0 = scmp.ne.s32.totalorder %s432_s23, %s551_s1  ;;  %p556_p1 = scmp.lt.s32.totalorder %s432_s23, %s432_s23 }
   0xf   :  { %495 = vmatpush3.xpose.msk.msra.mxu0 %vm40_vm0, %v24_v6  ;;  %p557_p2 = scmp.lt.s32.totalorder %s555_s24, %s551_s1 }
  0x10   :  { %496 = vmatprep.subr.msk.mxu0 %vm40_vm0, %v23_v7  ;;  %550 = vset.pattern.permute.xlu0 %v578_v41 }
  0x11   :  { %549 = vset.pattern.permute.xlu1 %v577_v33  ;;  %344 = vperm.xlu0 %550, %v341_v40   ;;  %p558_p3 = por %p557_p2, %p556_p1 }
  0x12   :  { %260 = vperm.xlu1 %549, %v257_v32  }
  0x13   :  { %497 = vmatpush3.xpose.msk.msra.mxu0 %vm40_vm0, %v23_v7  ;;  %p559_p4 = pnand %p558_p3, %p552_p0 }
  0x14   :  { %498 = vmatprep.subr.msk.mxu0 %vm40_vm0, %v22_v8 }
  0x17   :  { %499 = vmatpush3.xpose.msk.msra.mxu0 %vm40_vm0, %v22_v8 }
  0x18   :  { %500 = vmatprep.subr.msk.mxu0 %vm40_vm0, %v21_v9 }
  0x1b   :  { %501 = vmatpush3.xpose.msk.msra.mxu0 %vm40_vm0, %v21_v9 }
  0x1c   :  { %502 = vmatprep.subr.msk.mxu0 %vm40_vm0, %v20_v10 }
  0x1f   :  { %503 = vmatpush3.xpose.msk.msra.mxu0 %vm40_vm0, %v20_v10 }
  0x20   :  { %504 = vmatprep.subr.msk.mxu0 %vm40_vm0, %v19_v11 }
  0x23   :  { %505 = vmatpush3.xpose.msk.msra.mxu0 %vm40_vm0, %v19_v11 }
  0x24   :  { %506 = vmatprep.subr.msk.mxu0 %vm40_vm0, %v18_v12 }
  0x27   :  { %507 = vmatpush3.xpose.msk.msra.mxu0 %vm40_vm0, %v18_v12 }
  0x28   :  { %508 = vmatprep.subr.msk.mxu0 %vm40_vm0, %v17_v13 }
  0x2b   :  { %509 = vmatpush3.xpose.msk.msra.mxu0 %vm40_vm0, %v17_v13 }
  0x2c   :  { %510 = vmatprep.subr.msk.mxu0 %vm40_vm0, %v16_v14 }
  0x2f   :  { %511 = vmatpush3.xpose.msk.msra.mxu0 %vm40_vm0, %v16_v14 }
  0x30   :  { %512 = vmatprep.subr.msk.mxu0 %vm40_vm0, %v15_v15 }
  0x33   :  { %513 = vmatpush3.xpose.msk.msra.mxu0 %vm40_vm0, %v15_v15 }
  0x34   :  { %514 = vmatprep.subr.msk.mxu0 %vm40_vm0, %v14_v16 }
  0x37   :  { %515 = vmatpush3.xpose.msk.msra.mxu0 %vm40_vm0, %v14_v16 }
  0x38   :  { %516 = vmatprep.subr.msk.mxu0 %vm40_vm0, %v13_v17 }
  0x3b   :  { %517 = vmatpush3.xpose.msk.msra.mxu0 %vm40_vm0, %v13_v17 }
  0x3c   :  { %518 = vmatprep.subr.msk.mxu0 %vm40_vm0, %v12_v18 }
  0x3f   :  { %519 = vmatpush3.xpose.msk.msra.mxu0 %vm40_vm0, %v12_v18 }
  0x42   :  { %521 = vmatmul.mubr.msk.f32.vlgmr.msra.gmra.mxu0 %vm40_vm0, %v29_v5 }
  0x83   :  { %v38_v22 = vpop.permute.xlu0 %37 }
  0x87   :  { %v33_v25 = vpop.permute.xlu0 %32 }
  0x88   :  { %v176_v34 = vpop.permute.xlu1 %175 }
  0x8c   :  { %v345_v48 = vpop.permute.xlu0 %344 }
  0x8d   :  { %v261_v42 = vpop.permute.xlu1 %260 }
 0x102   :  { %v522_v23 = vpop.f32.mrf.mxu0 }
 0x103   :  { %v165_v24 = vadd.f32 %v522_v23, %v38_v22 }
 0x104   :  { %v159_v26 = vpop.f32.mrf.mxu0 }
 0x105   :  { %v169_v27 = vmul.f32 0.01, %v165_v24  ;;  %v160_v28 = vadd.f32 %v159_v26, %v33_v25 }
 0x107   :  { %v171_v29 = vmax.f32 %v165_v24, %v169_v27  ;;  %v168_v30 = vmul.f32 0.01, %v160_v28 }
 0x109   :  { %v170_v31 = vmax.f32 %v160_v28, %v168_v30  ;;  %524 = vmatpush3.msk.msra.mxu1 %vm181_vm2, %v171_v29 }
 0x10a   :  { %525 = vmatprep.subr.mxu1 %v574_v19 }
 0x10b   :  { %526 = vmatpush3.msra.mxu1 %v170_v31 }
 0x10c   :  { %528 = vmatmul.mubr.msk.f32.vlgmr.msra.gmra.mxu1 %vm178_vm3, %v172_v20  ;;  %530 = vmatprep.subr.mxu1 %v574_v19 }
 0x10d   :  { %532 = vmatprep.mubr.msk.f32.mxu1 %vm575_vm1, %v574_v19 }
 0x1cc   :  { %v251_v35 = vpop.f32.mrf.mxu1 }
 0x1cd   :  { %v252_v36 = vadd.f32 %v251_v35, %v176_v34 }
 0x1ce   :  { %v529_v37 = vpop.f32.mrf.mxu1 }
 0x1cf   :  { %v255_v38 = vmul.f32 0.01, %v252_v36 }
 0x1d1   :  { %v256_v39 = vmax.f32 %v252_v36, %v255_v38 }
 0x1d3   :  { %531 = vmatpush3.msk.msra.mxu1 %vm181_vm2, %v256_v39 }
 0x1d4   :  { %533 = vmatmul.mubr.msk.f32.vlgmr.msra.gmra.mxu1 %vm263_vm4, %v257_v32  ;;  %535 = vmatprep.subr.mxu1 %v574_v19 }
 0x1d5   :  { %537 = vmatprep.mubr.msk.f32.mxu1 %vm575_vm1, %v574_v19 }
 0x294   :  { %v335_v43 = vpop.f32.mrf.mxu1 }
 0x295   :  { %v336_v44 = vadd.f32 %v335_v43, %v261_v42 }
 0x296   :  { %v534_v45 = vpop.f32.mrf.mxu1 }
 0x297   :  { %v339_v46 = vmul.f32 0.01, %v336_v44 }
 0x299   :  { %v340_v47 = vmax.f32 %v336_v44, %v339_v46 }
 0x29b   :  { %536 = vmatpush3.msk.msra.mxu1 %vm350_vm5, %v340_v47 }
 0x29c   :  { %538 = vmatmul.mubr.msk.f32.vlgmr.msra.gmra.mxu1 %vm347_vm6, %v341_v40 }
 0x35c   :  { %v420_v49 = vpop.f32.mrf.mxu1 }
 0x35d   :  { %v421_v50 = vadd.f32 %v420_v49, %v345_v48 }
 0x35e   :  { %v539_v51 = vpop.f32.mrf.mxu1 }
 0x35f   :  { %424 = vst [vmem:[#allocation2] sm:$0x1] %v421_v50 }
 0x360   :  { %562 = shalt.err (!%p559_p4)
}
 0x361   :  { %434 = dma.vmem_to_hbm [thread:$0]  %s432_s23, 16, %s702_s2, [#allocation3]  }
 0x362   :  { %571 = dma.done.wait [#allocation3], 16  }
 0x363   :  { %572 = vsyncadd [#allocation3], 4294967280 }
 0x364   :  { %438 = vsyncpa [#allocation3], 1 }

</bundles_post_ra>
